<compile_context>
chip_gen: v7x
topology: tpu7x:2x2x1
jax: 0.10.0
libtpu: 0.0.40
codegen_flags: <defaults>
</compile_context>

<pallas_src>
import functools
from enum import Enum
from typing import NamedTuple

import jax
import jax.numpy as jnp
from jax.experimental import pallas as pl
from jax.experimental.pallas import tpu as pltpu


class Perturb(Enum):
    NONE = 0
    PREV = 1
    NEXT = 2


def _round_up(x: int, m: int) -> int:
    return (x + m - 1) // m * m


# -----------------------------------------------------------------------------
# Scalar glue: t = t.to(y.dtype); optional one-ULP nextafter.
# (_StitchGradient only alters backward, so the forward pass is the identity.)
# -----------------------------------------------------------------------------
def _nextafter_dtype_native(t, direction: int):
    """nextafter(t, t + direction) evaluated in t.dtype (finite t).

    jnp.nextafter on 16-bit floats may be lowered through f32 and round back to
    the same low-precision value, silently turning the 1-ULP step into a no-op
    (unlike torch.nextafter). For f16/bf16 we therefore step one ULP via
    integer bit-twiddling in the native dtype.
    """
    dt = jnp.dtype(t.dtype)
    if dt.itemsize >= 4:
        return jnp.nextafter(t, t + jnp.asarray(direction, t.dtype))
    bits = jax.lax.bitcast_convert_type(t, jnp.uint16)
    sign_neg = (bits & jnp.uint16(0x8000)) != 0
    is_zero = (bits & jnp.uint16(0x7FFF)) == 0
    one = jnp.uint16(1)
    if direction > 0:  # toward +inf
        stepped = jnp.where(sign_neg, bits - one, bits + one)
        zero_res = jnp.uint16(0x0001)  # smallest positive subnormal
    else:              # toward -inf
        stepped = jnp.where(sign_neg, bits + one, bits - one)
        zero_res = jnp.uint16(0x8001)  # smallest negative subnormal
    new_bits = jnp.where(is_zero, zero_res, stepped).astype(jnp.uint16)
    return jax.lax.bitcast_convert_type(new_bits, t.dtype)


# -----------------------------------------------------------------------------
# Parameter preparation (hoisted out of the per-call / per-RK-step hot path).
# -----------------------------------------------------------------------------
class PaddedParams(NamedTuple):
    """base_func parameters pre-padded to lane-dense (multiple-of-128) shapes."""
    w1: jax.Array  # (dim_p, hidden_p)
    b1: jax.Array  # (1, hidden_p)
    w2: jax.Array  # (hidden_p, dim_p)
    b2: jax.Array  # (1, dim_p)


def _pad2(a, rows, cols):
    pr, pc = rows - a.shape[0], cols - a.shape[1]
    return jnp.pad(a, ((0, pr), (0, pc))) if (pr or pc) else a


def prepare_params(params) -> PaddedParams:
    """Pad base_func params once, outside the ODE-solver loop.

    Zero-padding is what keeps the padded hidden columns harmless: they hold
    tanh(t) after the first matmul, but the matching zero rows of W2 null their
    contribution; padded batch rows / feature columns are sliced off on return.
    """
    w1, b1, w2, b2 = params
    dim, hidden = w1.shape
    assert w2.shape == (hidden, dim)
    dim_p, hidden_p = _round_up(dim, 128), _round_up(hidden, 128)
    return PaddedParams(
        w1=_pad2(w1, dim_p, hidden_p),
        b1=_pad2(jnp.reshape(b1, (1, hidden)), 1, hidden_p),
        w2=_pad2(w2, hidden_p, dim_p),
        b2=_pad2(jnp.reshape(b2, (1, dim)), 1, dim_p),
    )


# -----------------------------------------------------------------------------
# Capability / hardware queries (cached; cheap insurance for a one-shot run).
# -----------------------------------------------------------------------------
@functools.lru_cache(maxsize=None)
def _weight_buffer_count() -> int:
    """1 if the runtime accepts pipeline_mode=pl.Buffered(1) for grid-invariant
    operands (single-buffered resident weights -> halves their VMEM), else 2."""
    def _probe_kernel(x_ref, w_ref, o_ref):
        o_ref[...] = x_ref[...] + w_ref[...]

    try:
        with jax.ensure_compile_time_eval():
            f = pl.pallas_call(
                _probe_kernel,
                out_shape=jax.ShapeDtypeStruct((16, 128), jnp.float32),
                grid=(2,),
                in_specs=[
                    pl.BlockSpec((8, 128), lambda i: (i, 0)),
                    pl.BlockSpec((8, 128), lambda i: (0, 0),
                                 pipeline_mode=pl.Buffered(1)),
                ],
                out_specs=pl.BlockSpec((8, 128), lambda i: (i, 0)),
            )
            jax.block_until_ready(
                f(jnp.zeros((16, 128), jnp.float32),
                  jnp.ones((8, 128), jnp.float32)))
        return 1
    except Exception:
        return 2


@functools.lru_cache(maxsize=None)
def _vmem_capacity_bytes() -> int:
    """Physical VMEM per TensorCore (generation-aware); conservative fallback."""
    try:
        cap = int(pltpu.get_tpu_info().vmem_capacity_bytes)
        if cap > 0:
            return cap
    except Exception:
        pass
    return 64 << 20  # v7x per-TC size; safe lower bound for v5e/v6e (128 MiB)


# -----------------------------------------------------------------------------
# Kernel: base_func(t, y) = tanh(y @ W1 + b1 + t) @ W2 + b2 for one batch tile.
# -----------------------------------------------------------------------------
def _base_func_kernel(t_ref, y_ref, w1_ref, b1_ref, w2_ref, b2_ref, o_ref):
    # t arrives as an f32 SMEM scalar, already cast to y.dtype on the host
    # (exact round-trip for f16/bf16/f32), matching `t = t.to(y.dtype)`.
    t = t_ref[0]
    h = jnp.tanh(
        jnp.dot(y_ref[...], w1_ref[...], preferred_element_type=jnp.float32)
        + b1_ref[...].astype(jnp.float32)
        + t
    )
    o_ref[...] = (
        jnp.dot(h.astype(w2_ref.dtype), w2_ref[...],
                preferred_element_type=jnp.float32)
        + b2_ref[...].astype(jnp.float32)
    ).astype(o_ref.dtype)


@functools.partial(jax.jit, static_argnames=("perturb", "weight_bufs"))
def _perturb_func_impl(t, y, pp: PaddedParams, *, perturb: Perturb, weight_bufs: int):
    # --- _PerturbFunc.forward scalar glue --------------------------------------
    t = jnp.asarray(t).astype(y.dtype)          # t = t.to(y.dtype)
    if perturb is Perturb.NEXT:
        t = _nextafter_dtype_native(t, +1)
    elif perturb is Perturb.PREV:
        t = _nextafter_dtype_native(t, -1)
    # Ship through SMEM as f32 (exact for any f16/bf16/f32 value).
    # TODO(synk): fold the cast + ULP step fully in-kernel (perturb mode as a
    # scalar-prefetch arg) to drop these per-step scalar XLA ops entirely.
    t32 = t.astype(jnp.float32).reshape(1)
    # ---------------------------------------------------------------------------

    batch, dim = y.shape
    dim_p, hidden_p = pp.w1.shape
    assert dim_p == _round_up(dim, 128) and pp.w2.shape == (hidden_p, dim_p), \
        "params must be prepared with prepare_params() for this y"

    y_isz = jnp.dtype(y.dtype).itemsize
    p_isz = jnp.dtype(pp.w1.dtype).itemsize

    # --- generation-aware VMEM budget & batch-tile selection -------------------
    vmem_budget = _vmem_capacity_bytes() - (8 << 20)   # headroom for compiler scratch
    weight_bytes = weight_bufs * p_isz * (2 * dim_p * hidden_p + 8 * (hidden_p + dim_p))
    per_row = 2 * 2 * dim_p * y_isz + 4 * (hidden_p + dim_p)  # y/out dbl-buf + f32 temps
    avail = vmem_budget - weight_bytes - (4 << 20)
    batch8 = _round_up(batch, 8)
    tb = max(8, min(1024, (max(avail, 0) // per_row) // 8 * 8, batch8))
    if batch8 >= 16:
        # v7x has 2 TensorCores; keep >=2 grid steps so the "parallel" axis
        # actually feeds both of them.
        tb = min(tb, _round_up(pl.cdiv(batch8, 2), 8))
    tb = max(tb, 8)
    batch_p = _round_up(batch, tb)

    y_p = _pad2(y, batch_p, dim_p)

    need = weight_bytes + 2 * 2 * tb * dim_p * y_isz + 4 * tb * (hidden_p + dim_p)
    vmem_limit = int(min(vmem_budget, max(32 << 20, int(1.5 * need) + (2 << 20))))

    cost = pl.CostEstimate(
        flops=4 * batch_p * dim_p * hidden_p,              # two matmuls
        transcendentals=batch_p * hidden_p,                # tanh
        bytes_accessed=2 * batch_p * dim_p * y_isz
        + (2 * dim_p * hidden_p + hidden_p + dim_p) * p_isz,
    )

    def _resident(shape):
        # Grid-invariant weights: constant index_map, so default 2-deep
        # buffering only doubles VMEM with zero overlap benefit.
        if weight_bufs == 1:
            return pl.BlockSpec(shape, lambda i: (0, 0),
                                pipeline_mode=pl.Buffered(1))
        return pl.BlockSpec(shape, lambda i: (0, 0))

    # TODO(synk): for very large hidden (resident weights > ~40 MiB) add a
    # K-tiled 'arbitrary' grid axis over hidden with an f32 accumulator scratch
    # instead of keeping both weight matrices fully resident (v7x 64 MiB VMEM).
    out_p = pl.pallas_call(
        _base_func_kernel,
        out_shape=jax.ShapeDtypeStruct((batch_p, dim_p), y.dtype),
        grid_spec=pltpu.PrefetchScalarGridSpec(
            num_scalar_prefetch=0,
            grid=(batch_p // tb,),
            in_specs=[
                pl.BlockSpec(memory_space=pltpu.MemorySpace.SMEM),  # t (f32 scalar)
                pl.BlockSpec((tb, dim_p), lambda i: (i, 0)),        # y batch tile
                _resident((dim_p, hidden_p)),                       # W1 (resident)
                _resident((1, hidden_p)),                           # b1 (resident)
                _resident((hidden_p, dim_p)),                       # W2 (resident)
                _resident((1, dim_p)),                              # b2 (resident)
            ],
            out_specs=pl.BlockSpec((tb, dim_p), lambda i: (i, 0)),
        ),
        compiler_params=pltpu.CompilerParams(
            dimension_semantics=("parallel",),   # megacore / dual-TC sharding
            vmem_limit_bytes=vmem_limit,
        ),
        cost_estimate=cost,
    )(t32, y_p, pp.w1, pp.b1, pp.w2, pp.b2)

    return out_p[:batch, :dim]


def perturb_func(t, y, params, *, perturb=Perturb.NONE):
    """Forward pass of _PerturbFunc(base_func)(t, y, perturb=...).

    `params` should be a PaddedParams (call prepare_params once, outside the
    ODE-solver loop). A raw (w1, b1, w2, b2) tuple is accepted but re-padded
    every call (slow path).
    """
    assert isinstance(perturb, Perturb), "perturb argument must be of type Perturb enum"
    if not isinstance(params, PaddedParams):
        params = prepare_params(params)
    return _perturb_func_impl(t, y, params, perturb=perturb,
                              weight_bufs=_weight_buffer_count())


def _reference(t, y, params, *, perturb=Perturb.NONE):
    w1, b1, w2, b2 = params
    t = jnp.asarray(t).astype(y.dtype)
    if perturb is Perturb.NEXT:
        t = _nextafter_dtype_native(t, +1)
    elif perturb is Perturb.PREV:
        t = _nextafter_dtype_native(t, -1)
    h = jnp.tanh(y @ w1 + jnp.reshape(b1, (1, -1)) + t)
    return h @ w2 + jnp.reshape(b2, (1, -1))


if __name__ == "__main__":
    batch, dim, hidden = 8, 32, 64
    dtype = jnp.float32   # pass bf16 y/params on v6e/v7x for the native-MXU path

    key = jax.random.PRNGKey(0)
    kw1, kb1, kw2, kb2, ky = jax.random.split(key, 5)
    # Deterministic synthetic parameters for base_func (neural-ODE style MLP).
    w1 = jax.random.normal(kw1, (dim, hidden), dtype) * 0.1
    b1 = jax.random.normal(kb1, (1, hidden), dtype) * 0.1
    w2 = jax.random.normal(kw2, (hidden, dim), dtype) * 0.1
    b2 = jax.random.normal(kb2, (1, dim), dtype) * 0.1
    params = (w1, b1, w2, b2)
    padded = prepare_params(params)   # hoisted out of the "solver loop"

    y = jax.random.normal(ky, (batch, dim), dtype)
    t = jnp.array(0.5, dtype=jnp.float32)

    ok = True
    for mode in (Perturb.NONE, Perturb.NEXT, Perturb.PREV):
        out = jax.block_until_ready(perturb_func(t, y, padded, perturb=mode))
        ref = _reference(t, y, params, perturb=mode)
        ok = ok and bool(jnp.allclose(out, ref, atol=1e-5, rtol=1e-5))
        assert out.shape == y.shape and out.dtype == y.dtype

    print("KERNEL_OK" if ok else "MISMATCH")
</pallas_src>

<mosaic_0001>
module attributes {stable_mosaic.version = 11 : i64} {
  func.func @_probe_kernel(%arg0: i32, %arg1: memref<8x128xf32, #tpu.memory_space<vmem>>, %arg2: memref<8x128xf32, #tpu.memory_space<vmem>>, %arg3: memref<8x128xf32, #tpu.memory_space<vmem>>) attributes {dimension_semantics = [#tpu.dimension_semantics<arbitrary>], iteration_bounds = array<i64: 2>, scalar_prefetch = 0 : i64, scratch_operands = 0 : i64, tpu.core_type = #tpu.core_type<tc>, window_params = [{transform_indices = @transform_0, window_bounds = array<i64: 8, 128>}, {pipeline_mode = #tpu.pipeline_mode<synchronous>, transform_indices = @transform_1, window_bounds = array<i64: 8, 128>}, {transform_indices = @transform_2, window_bounds = array<i64: 8, 128>}]} {
    %c0 = arith.constant 0 : index
    %c0_0 = arith.constant 0 : index
    %0 = vector.load %arg1[%c0, %c0_0] : memref<8x128xf32, #tpu.memory_space<vmem>>, vector<8x128xf32>
    %c0_1 = arith.constant 0 : index
    %c0_2 = arith.constant 0 : index
    %1 = vector.load %arg2[%c0_1, %c0_2] : memref<8x128xf32, #tpu.memory_space<vmem>>, vector<8x128xf32>
    %2 = arith.addf %0, %1 : vector<8x128xf32>
    %c0_3 = arith.constant 0 : index
    %c0_4 = arith.constant 0 : index
    %3 = vector.load %arg3[%c0_3, %c0_4] : memref<8x128xf32, #tpu.memory_space<vmem>>, vector<8x128xf32>
    tpu.vector_store %arg3[%c0_3, %c0_4], %2 {strides = array<i32>} : memref<8x128xf32, #tpu.memory_space<vmem>>, vector<8x128xf32>,
    return
  }
  func.func @transform_0(%arg0: i32) -> (i32, i32) {
    %c0_i32 = arith.constant 0 : i32
    %c0_i32_0 = arith.constant 0 : i32
    return %arg0, %c0_i32 : i32, i32
  }
  func.func @transform_1(%arg0: i32) -> (i32, i32) {
    %c0_i32 = arith.constant 0 : i32
    %c0_i32_0 = arith.constant 0 : i32
    %c0_i32_1 = arith.constant 0 : i32
    return %c0_i32, %c0_i32_0 : i32, i32
  }
  func.func @transform_2(%arg0: i32) -> (i32, i32) {
    %c0_i32 = arith.constant 0 : i32
    %c0_i32_0 = arith.constant 0 : i32
    return %arg0, %c0_i32 : i32, i32
  }
}

module attributes {stable_mosaic.version = 11 : i64} {
  func.func @_base_func_kernel(%arg0: i32, %arg1: memref<1xf32, #tpu.memory_space<smem>>, %arg2: memref<8x128xf32, #tpu.memory_space<vmem>>, %arg3: memref<128x128xf32, #tpu.memory_space<vmem>>, %arg4: memref<1x128xf32, #tpu.memory_space<vmem>>, %arg5: memref<128x128xf32, #tpu.memory_space<vmem>>, %arg6: memref<1x128xf32, #tpu.memory_space<vmem>>, %arg7: memref<8x128xf32, #tpu.memory_space<vmem>>) attributes {dimension_semantics = [#tpu.dimension_semantics<parallel>], iteration_bounds = array<i64: 1>, scalar_prefetch = 0 : i64, scratch_operands = 0 : i64, tpu.core_type = #tpu.core_type<tc>, window_params = [{transform_indices = @transform_0, window_bounds = array<i64: 1>}, {transform_indices = @transform_1, window_bounds = array<i64: 8, 128>}, {pipeline_mode = #tpu.pipeline_mode<synchronous>, transform_indices = @transform_2, window_bounds = array<i64: 128, 128>}, {pipeline_mode = #tpu.pipeline_mode<synchronous>, transform_indices = @transform_3, window_bounds = array<i64: 1, 128>}, {pipeline_mode = #tpu.pipeline_mode<synchronous>, transform_indices = @transform_4, window_bounds = array<i64: 128, 128>}, {pipeline_mode = #tpu.pipeline_mode<synchronous>, transform_indices = @transform_5, window_bounds = array<i64: 1, 128>}, {transform_indices = @transform_6, window_bounds = array<i64: 8, 128>}]} {
    %c0 = arith.constant 0 : index
    %0 = memref.load %arg1[%c0] : memref<1xf32, #tpu.memory_space<smem>>
    %c0_0 = arith.constant 0 : index
    %c0_1 = arith.constant 0 : index
    %1 = vector.load %arg2[%c0_0, %c0_1] : memref<8x128xf32, #tpu.memory_space<vmem>>, vector<8x128xf32>
    %c0_2 = arith.constant 0 : index
    %c0_3 = arith.constant 0 : index
    %2 = vector.load %arg3[%c0_2, %c0_3] : memref<128x128xf32, #tpu.memory_space<vmem>>, vector<128x128xf32>
    %cst = arith.constant dense<0.000000e+00> : vector<8x128xf32>
    %3 = tpu.matmul %1, %2, %cst {dimension_numbers = #tpu.dot_dimension_numbers<[1], [0], [0], [1], [0, 0, 1, 1], [], []>} : vector<8x128xf32>, vector<128x128xf32>, vector<8x128xf32> -> vector<8x128xf32>
    %c0_4 = arith.constant 0 : index
    %c0_5 = arith.constant 0 : index
    %4 = vector.load %arg4[%c0_4, %c0_5] : memref<1x128xf32, #tpu.memory_space<vmem>>, vector<1x128xf32>
    %5 = vector.broadcast %4 : vector<1x128xf32> to vector<8x128xf32>
    %6 = arith.addf %3, %5 : vector<8x128xf32>
    %7 = vector.broadcast %0 : f32 to vector<8x128xf32>
    %8 = arith.addf %6, %7 : vector<8x128xf32>
    %9 = math.tanh %8 : vector<8x128xf32>
    %c0_6 = arith.constant 0 : index
    %c0_7 = arith.constant 0 : index
    %10 = vector.load %arg5[%c0_6, %c0_7] : memref<128x128xf32, #tpu.memory_space<vmem>>, vector<128x128xf32>
    %cst_8 = arith.constant dense<0.000000e+00> : vector<8x128xf32>
    %11 = tpu.matmul %9, %10, %cst_8 {dimension_numbers = #tpu.dot_dimension_numbers<[1], [0], [0], [1], [0, 0, 1, 1], [], []>} : vector<8x128xf32>, vector<128x128xf32>, vector<8x128xf32> -> vector<8x128xf32>
    %c0_9 = arith.constant 0 : index
    %c0_10 = arith.constant 0 : index
    %12 = vector.load %arg6[%c0_9, %c0_10] : memref<1x128xf32, #tpu.memory_space<vmem>>, vector<1x128xf32>
    %13 = vector.broadcast %12 : vector<1x128xf32> to vector<8x128xf32>
    %14 = arith.addf %11, %13 : vector<8x128xf32>
    %c0_11 = arith.constant 0 : index
    %c0_12 = arith.constant 0 : index
    %15 = vector.load %arg7[%c0_11, %c0_12] : memref<8x128xf32, #tpu.memory_space<vmem>>, vector<8x128xf32>
    tpu.vector_store %arg7[%c0_11, %c0_12], %14 {strides = array<i32>} : memref<8x128xf32, #tpu.memory_space<vmem>>, vector<8x128xf32>,
    return
  }
  func.func @transform_0(%arg0: i32) -> i32 {
    %c0_i32 = arith.constant 0 : i32
    %c0_i32_0 = arith.constant 0 : i32
    return %c0_i32 : i32
  }
  func.func @transform_1(%arg0: i32) -> (i32, i32) {
    %c0_i32 = arith.constant 0 : i32
    %c0_i32_0 = arith.constant 0 : i32
    return %arg0, %c0_i32 : i32, i32
  }
  func.func @transform_2(%arg0: i32) -> (i32, i32) {
    %c0_i32 = arith.constant 0 : i32
    %c0_i32_0 = arith.constant 0 : i32
    %c0_i32_1 = arith.constant 0 : i32
    return %c0_i32, %c0_i32_0 : i32, i32
  }
  func.func @transform_3(%arg0: i32) -> (i32, i32) {
    %c0_i32 = arith.constant 0 : i32
    %c0_i32_0 = arith.constant 0 : i32
    %c0_i32_1 = arith.constant 0 : i32
    return %c0_i32, %c0_i32_0 : i32, i32
  }
  func.func @transform_4(%arg0: i32) -> (i32, i32) {
    %c0_i32 = arith.constant 0 : i32
    %c0_i32_0 = arith.constant 0 : i32
    %c0_i32_1 = arith.constant 0 : i32
    return %c0_i32, %c0_i32_0 : i32, i32
  }
  func.func @transform_5(%arg0: i32) -> (i32, i32) {
    %c0_i32 = arith.constant 0 : i32
    %c0_i32_0 = arith.constant 0 : i32
    %c0_i32_1 = arith.constant 0 : i32
    return %c0_i32, %c0_i32_0 : i32, i32
  }
  func.func @transform_6(%arg0: i32) -> (i32, i32) {
    %c0_i32 = arith.constant 0 : i32
    %c0_i32_0 = arith.constant 0 : i32
    return %arg0, %c0_i32 : i32, i32
  }
}

</mosaic_0001>

<bundles_post_ra>
// kernel: tpu_custom_call.1
= control target key start
LH: loop header
LB: loop body
LE: loop exit
PB: predicated region body
PF: predicated region fallthrough
CT: control target
= control target key end

     0   :  { %7 = vsyncpa [#allocation3], 0  ;;  %s690_s0 = inlined_call_operand.hbm [shape: f32[16,128], index: 0, kind: input, shape index: {}]   ;;  %s691_s1 = inlined_call_operand.hbm [shape: f32[8,128], index: 1, kind: input, shape index: {}]   ;;  %s692_s2 = inlined_call_operand.hbm [shape: f32[16,128], index: 2, kind: output, shape index: {}]  }
   0x1   :  { %9 = vsyncpa [#allocation3 + $0x1], 0 }
   0x2   :  { %10 = vsyncpa [#allocation6], 0 }
   0x3   :  { %11 = vsyncpa [#allocation4], 0 }
   0x4   :  { %13 = vsyncpa [#allocation4 + $0x1], 0  ;;  %s489_s9 = smov 0   ;;  %s491_s10 = smov 0  }
   0x5   :  { %s493_s11 = smov 0   ;;  %s495_s12 = smov 0  }
   0x6 LB: > { %s510_s13 = sadd.s32 4294967295, %s469_s12   ;;  %s270_s14 = sadd.s32 4294967294, %s469_s12   ;;  %s469_s12 = sphi %s495_s12, %s716_s12   ;;  %s465_s11 = sphi %s493_s11, %s715_s11   ;;  %s461_s10 = sphi %s491_s10, %s714_s10   ;;  %s457_s9 = sphi %s489_s9, %s713_s9  }
   0x7   : > { %p39_p0 = scmp.ne.s32.totalorder %s461_s10, %s457_s9  ;;  %p693_p1 = scmp.eq.s32.totalorder %s510_s13, 0 }
   0x8   : > { %p90_p3 = scmp.eq.s32.totalorder %s270_s14, 1  ;;  %p271_p5 = scmp.ge.s32.totalorder %s469_s12, 1 }
   0x9   : > { %p519_p4 = por %p693_p1, %p39_p0  ;;  %p97_p7 = scmp.lt.s32.totalorder %s469_s12, 3 }
   0xa   : > { %p524_p6 = por %p90_p3, %p39_p0  ;;  %s471_s18 = smov [#allocation5]  }
   0xb   : > { %s696_s15 = scalar_select %p519_p4, 1, 0 }
   0xc   : > { %s697_s16 = scalar_select %p524_p6, 1, 0 }
   0xd   : > { %p529_p8 = pnand %p271_p5, %p97_p7  ;;  %s110_s19 = sshll.u32 %s471_s18, 4  ;;  %s111_s19 = int_to_ptr.vmem [resolvable:$true] %s110_s19 }
   0xe   : > { %s537_s20 = sadd.s32 1, %s469_s12   ;;  %s26_s24 = sadd.s32 1, %s465_s11 }
   0xf   : > { %s698_s17 = scalar_select %p529_p8, 1, 0 }
  0x10   : > { %p292_p10 = pneg %p529_p8  ;;  %s23_s22 = ssub.s32 %s469_s12, %s537_s20 }
  0x11   : > { %p547_p12 = scmp.eq.s32.totalorder %s23_s22, 0  ;;  %s341_s27 = scalar_lea.hbm %s691_s1, 128 }
  0x12   : > { %p541_p11 = pnand %p292_p10, %p693_p1  ;;  %p342_p0 = scmp.ne.s32.totalorder %s691_s1, %s341_s27 }
  0x13   : > { %s700_s23 = scalar_select %p547_p12, 1, 0 }
  0x14   : > { %p343_p3 = pneg %p541_p11  ;;  %p348_p10 = scmp.lt.u32.totalorder %s341_s27, %s691_s1 }
  0x16   : > { %p344_p5 = pnand %p343_p3, %p342_p0 }
  0x18   : > { %p345_p7 = pneg %p344_p5 }
  0x1a   : > { %p350_p9 = pnand %p348_p10, %p345_p7 }
  0x1c   : > { %353 = shalt.err (!%p350_p9)
}
  0x1d   : > { %s354_s4 = scalar_lea.vmem %s111_s19, 128  ;;  %p362_p6 = scmp.lt.s32.totalorder %s111_s19, %s111_s19 }
  0x1e   : > { %p355_p1 = scmp.ne.s32.totalorder %s111_s19, %s354_s4  ;;  %p363_p4 = scmp.lt.s32.totalorder %s354_s4, %s354_s4 }
  0x20   : > { %p357_p2 = pnand %p355_p1, %p343_p3  ;;  %p364_p8 = por %p363_p4, %p362_p6 }
  0x22   : > { %p358_p13 = pneg %p357_p2 }
  0x24   : > { %p365_p12 = pnand %p364_p8, %p358_p13 }
  0x26   : > { %368 = shalt.err (!%p365_p12)
}
  0x27   : > { %295 = dma.hbm_to_vmem [thread:$0]  (!%p541_p11), %s691_s1, 128, %s111_s19, [#allocation6]  }
  0x28   : > { %p701_p1 = scmp.ne.s32.totalorder %s700_s23, 0  ;;  %p34_p2 = scmp.eq.s32.totalorder %s469_s12, 0 }
  0x29   : > { %p702_p4 = scmp.ne.s32.totalorder %s465_s11, %s461_s10  ;;  %p703_p6 = scmp.eq.s32.totalorder %s510_s13, 1 }
  0x2a   : > { %s573_s7 = scalar_select %p701_p1, %s465_s11, %s26_s24  }
  0x2b   : > { %p581_p8 = por %p703_p6, %p702_p4  ;;  %p305_p9 = scmp.lt.s32.totalorder %s469_s12, 2 }
  0x2c   : > { %s121_s14 = sand.u32 1, %s465_s11   ;;  %p705_p12 = pmov %p702_p4 }
  0x2d   : > { %s274_s18 = sshll.u32 %s121_s14, 3  ;;  %s275_s21 = sshll.u32 %s469_s12, 7 }
  0x2e   : > { %p35_p13 = por %p34_p2, %p705_p12  ;;  %s594_s19 = scalar_lea.hbm %s690_s0, %s275_s21 }
  0x2f   : > { %s125_s23 = scalar_lea.vmem [#allocation2], %s274_s18  ;;  %s122_s27 = scalar_lea.sflag [#allocation3], %s121_s14 }
  0x30   : > { %s132_s24 = sshll.u32 %s125_s23, 4  ;;  %p596_p11 = pnand %p305_p9, %p35_p13  ;;  %s600_s24 = int_to_ptr.vmem [resolvable:$true] %s132_s24 }
  0x31   : > { %s369_s28 = scalar_lea.hbm %s594_s19, 128  ;;  %s374_s3 = scalar_lea.hbm %s690_s0, 256 }
  0x32   : > { %p370_p0 = scmp.ne.s32.totalorder %s594_s19, %s369_s28  ;;  %p371_p3 = pneg %p596_p11 }
  0x33   : > { %p375_p10 = scmp.lt.u32.totalorder %s594_s19, %s690_s0  ;;  %p376_p1 = scmp.lt.u32.totalorder %s374_s3, %s369_s28 }
  0x34   : > { %p372_p5 = pnand %p371_p3, %p370_p0  ;;  %p378_p4 = scmp.lt.u32.totalorder %s369_s28, %s594_s19 }
  0x35   : > { %p377_p2 = por %p376_p1, %p375_p10 }
  0x36   : > { %p373_p7 = pneg %p372_p5 }
  0x37   : > { %p379_p6 = por %p378_p4, %p377_p2 }
  0x39   : > { %p380_p9 = pnand %p379_p6, %p373_p7 }
  0x3b   : > { %383 = shalt.err (!%p380_p9)
}
  0x3c   : > { %s384_s6 = scalar_lea.vmem %s600_s24, 128  ;;  %s472_s14 = smov [#allocation2]  }
  0x3d   : > { %p385_p12 = scmp.ne.s32.totalorder %s600_s24, %s384_s6  ;;  %s389_s18 = sshll.u32 %s472_s14, 4  ;;  %s390_s18 = int_to_ptr.vmem [resolvable:$false] %s389_s18 }
  0x3e   : > { %s391_s21 = scalar_lea.vmem %s390_s18, 256  ;;  %p392_p5 = scmp.lt.s32.totalorder %s600_s24, %s390_s18 }
  0x3f   : > { %p387_p13 = pnand %p385_p12, %p371_p3  ;;  %p393_p10 = scmp.lt.s32.totalorder %s391_s21, %s384_s6 }
  0x41   : > { %p388_p0 = pneg %p387_p13  ;;  %p394_p1 = por %p393_p10, %p392_p5 }
  0x43   : > { %p395_p2 = pnand %p394_p1, %p388_p0 }
  0x45   : > { %398 = shalt.err (!%p395_p2)
}
  0x46   : > { %299 = dma.hbm_to_vmem [thread:$0]  (!%p596_p11), %s594_s19, 128, %s600_s24, %s122_s27  }
  0x47   : > { %p707_p7 = scmp.ne.s32.totalorder %s698_s17, 0 }
  0x48   : > { %s630_s22 = sand.u32 (!%p707_p7), 1, %s461_s10   ;;  %p708_p3 = scmp.ne.s32.totalorder (!%p707_p7), %s696_s15, 0 }
  0x49   : > { %141 = sbr.rel (%p707_p7) target bundleno = 109 (0x6d), region = 28  ;;  %s277_s25 = sshll.u32 (!%p707_p7), %s630_s22, 3 }
  0x4a   : > { %s144_s23 = scalar_lea.sflag (!%p707_p7), [#allocation3], %s630_s22  ;;  %s147_s28 = scalar_lea.vmem (!%p707_p7), [#allocation2], %s277_s25 }
  0x50   : > { %444 = dma.done.wait (%p708_p3), %s144_s23, 128  }
  0x51   : > { %446 = vsyncadd (%p708_p3), %s144_s23, 4294967168  ;;  %p709_p4 = scmp.eq.s32.totalorder %s510_s13, 0 }
  0x53   : > { %448 = dma.done.wait (%p709_p4), [#allocation6], 128   ;;  %p710_p11 = pmov %p709_p4 }
  0x54   : > { %s171_s17 = scalar_lea.vmem [#allocation7], %s277_s25  ;;  %s281_s24 = sshll.u32 %s510_s13, 7  ;;  %v172_v0 = vld [vmem:[%s147_s28] sm:$0xff]  ;;  %v173_v1 = vld [vmem:[#allocation5] sm:$0xff] }
  0x55   : > { %450 = vsyncadd (%p710_p11), [#allocation6], 4294967168  ;;  %s190_s19 = sshll.u32 %s171_s17, 4  ;;  %v174_v2 = vadd.f32 %v173_v1, %v172_v0  ;;  %s648_s27 = scalar_lea.hbm %s692_s2, %s281_s24  ;;  %s643_s19 = int_to_ptr.vmem [resolvable:$true] %s190_s19 }
  0x56   : > { %s177_s29 = scalar_lea.sflag [#allocation4], %s630_s22  ;;  %s399_s30 = scalar_lea.vmem %s643_s19, 128 }
  0x57   : > { %175 = vst [vmem:[%s171_s17] sm:$0xff] %v174_v2  ;;  %p400_p6 = scmp.ne.s32.totalorder %s643_s19, %s399_s30  ;;  %s473_s13 = smov [#allocation7]  }
  0x58   : > { %s403_s3 = sshll.u32 %s473_s13, 4  ;;  %s404_s3 = int_to_ptr.vmem [resolvable:$false] %s403_s3 }
  0x59   : > { %p401_p9 = pnand %p400_p6, %p581_p8  ;;  %s405_s4 = scalar_lea.vmem %s404_s3, 256 }
  0x5a   : > { %p406_p13 = scmp.lt.s32.totalorder %s643_s19, %s404_s3  ;;  %p407_p0 = scmp.lt.s32.totalorder %s405_s4, %s399_s30 }
  0x5b   : > { %p402_p12 = pneg %p401_p9 }
  0x5c   : > { %p408_p5 = por %p407_p0, %p406_p13 }
  0x5e   : > { %p409_p10 = pnand %p408_p5, %p402_p12 }
  0x60   : > { %412 = shalt.err (!%p409_p10)
}
  0x61   : > { %s413_s5 = scalar_lea.hbm %s648_s27, 128  ;;  %s417_s18 = scalar_lea.hbm %s692_s2, 256 }
  0x62   : > { %p414_p1 = scmp.ne.s32.totalorder %s648_s27, %s413_s5  ;;  %p418_p3 = scmp.lt.u32.totalorder %s648_s27, %s692_s2 }
  0x63   : > { %p419_p4 = scmp.lt.u32.totalorder %s417_s18, %s413_s5  ;;  %p421_p6 = scmp.lt.u32.totalorder %s413_s5, %s648_s27 }
  0x64   : > { %p415_p2 = pnand %p414_p1, %p581_p8 }
  0x65   : > { %p420_p11 = por %p419_p4, %p418_p3 }
  0x66   : > { %p416_p7 = pneg %p415_p2 }
  0x67   : > { %p422_p9 = por %p421_p6, %p420_p11 }
  0x69   : > { %p423_p12 = pnand %p422_p9, %p416_p7 }
  0x6b   : > { %426 = shalt.err (!%p423_p12)
}
  0x6c   : > { %290 = dma.vmem_to_hbm [thread:$0]  (%p581_p8), %s643_s19, 128, %s648_s27, %s177_s29  }
  0x6d PF: > { %s202_s25 = sand.u32 1, %s457_s9   ;;  %p711_p13 = scmp.ne.s32.totalorder %s697_s16, 0 }
  0x6e   : > { %p712_p0 = scmp.ge.s32.totalorder %s469_s12, 2  ;;  %s203_s23 = scalar_lea.sflag [#allocation4], %s202_s25 }
  0x70   : > { %p301_p5 = pnand %p712_p0, %p711_p13 }
  0x72   : > { %452 = dma.done.wait (!%p301_p5), %s203_s23, 128  }
  0x73   : > { %454 = vsyncadd (!%p301_p5), %s203_s23, 4294967168  ;;  %p16_p10 = scmp.ge.s32.totalorder %s537_s20, 4   ;;  %s713_s9 = smov %s461_s10 }
  0x74   : > { %s714_s10 = smov %s465_s11  ;;  %s715_s11 = smov %s573_s7 }
  0x75   : > { %s716_s12 = smov %s537_s20  ;;  %18 = sbr.rel (!%p16_p10) target bundleno = 6 (0x6), region = 77 }
  0x7c   :  { %208 = vsyncpa [#allocation3], 1 }
  0x7d   :  { %210 = vsyncpa [#allocation3 + $0x1], 1 }
  0x7e   :  { %211 = vsyncpa [#allocation6], 1 }
  0x7f   :  { %212 = vsyncpa [#allocation4], 1 }
  0x80   :  { %214 = vsyncpa [#allocation4 + $0x1], 1 }

// kernel: _perturb_func_impl.1
= control target key start
LH: loop header
LB: loop body
LE: loop exit
PB: predicated region body
PF: predicated region fallthrough
CT: control target
= control target key end

     0   :  { %12 = vsyncpa [#allocation4], 0  ;;  %s604_s0 = inlined_call_operand.<no memory space> [shape: f32[1], index: 0, kind: input, shape index: {}]   ;;  %s605_s1 = inlined_call_operand.vmem [shape: f32[8,128], index: 1, kind: input, shape index: {}]   ;;  %s606_s2 = inlined_call_operand.hbm [shape: f32[128,128], index: 2, kind: input, shape index: {}]   ;;  %s607_s3 = inlined_call_operand.vmem [shape: f32[1,128], index: 3, kind: input, shape index: {}]   ;;  %s608_s4 = inlined_call_operand.hbm [shape: f32[128,128], index: 4, kind: input, shape index: {}]   ;;  %s609_s5 = inlined_call_operand.vmem [shape: f32[1,128], index: 5, kind: input, shape index: {}]   ;;  %s610_s6 = inlined_call_operand.hbm [shape: f32[8,128], index: 6, kind: output, shape index: {}]  }
   0x1   :  { %13 = vsyncpa [#allocation7], 0 }
   0x2   :  { %14 = vsyncpa [#allocation5], 0  ;;  %s497_s21 = smov [#allocation3]   ;;  %s425_s25 = scalar_lea.hbm %s606_s2, 2048 }
   0x3   :  { %s24_s22 = sshll.u32 %s497_s21, 4  ;;  %p426_p0 = scmp.ne.s32.totalorder %s606_s2, %s425_s25  ;;  %s25_s22 = int_to_ptr.vmem [resolvable:$true] %s24_s22 }
   0x4   :  { %p429_p1 = scmp.lt.u32.totalorder %s425_s25, %s606_s2 }
   0x6   :  { %p431_p2 = pnand %p429_p1, %p426_p0 }
   0x8   :  { %434 = shalt.err (!%p431_p2)
}
   0x9   :  { %s435_s30 = scalar_lea.vmem %s25_s22, 2048  ;;  %p440_p4 = scmp.lt.s32.totalorder %s25_s22, %s25_s22 }
   0xa   :  { %p436_p3 = scmp.ne.s32.totalorder %s25_s22, %s435_s30  ;;  %p441_p5 = scmp.lt.s32.totalorder %s435_s30, %s435_s30 }
   0xc   :  { %p442_p6 = por %p441_p5, %p440_p4 }
   0xe   :  { %p443_p7 = pnand %p442_p6, %p436_p3 }
  0x10   :  { %446 = shalt.err (!%p443_p7)
}
  0x11   :  { %s498_s7 = smov 128   ;;  %s499_s8 = smov 8  }
  0x12   :  { %30 = dma.hbm_to_vmem [thread:$0]  %s606_s2, 2048, %s25_s22, [#allocation4], %s498_s7, %s498_s7, %s499_s8  }
  0x13   :  { %s500_s11 = smov [#allocation6]   ;;  %s447_s15 = scalar_lea.hbm %s608_s4, 2048 }
  0x14   :  { %s38_s12 = sshll.u32 %s500_s11, 4  ;;  %p448_p8 = scmp.ne.s32.totalorder %s608_s4, %s447_s15  ;;  %s39_s12 = int_to_ptr.vmem [resolvable:$true] %s38_s12 }
  0x15   :  { %p451_p9 = scmp.lt.u32.totalorder %s447_s15, %s608_s4 }
  0x17   :  { %p453_p10 = pnand %p451_p9, %p448_p8 }
  0x19   :  { %456 = shalt.err (!%p453_p10)
}
  0x1a   :  { %s457_s20 = scalar_lea.vmem %s39_s12, 2048  ;;  %p462_p12 = scmp.lt.s32.totalorder %s39_s12, %s39_s12 }
  0x1b   :  { %p458_p11 = scmp.ne.s32.totalorder %s39_s12, %s457_s20  ;;  %p463_p13 = scmp.lt.s32.totalorder %s457_s20, %s457_s20 }
  0x1d   :  { %p464_p0 = por %p463_p13, %p462_p12 }
  0x1f   :  { %p465_p1 = pnand %p464_p0, %p458_p11 }
  0x21   :  { %468 = shalt.err (!%p465_p1)
}
  0x22   :  { %44 = dma.hbm_to_vmem [thread:$0]  %s608_s4, 2048, %s39_s12, [#allocation7], %s498_s7, %s498_s7, %s499_s8  }
  0x23   :  { %491 = dma.done.wait [#allocation4], 2048  }
  0x24   :  { %492 = vsyncadd [#allocation4], 4294965248 }
  0x25   :  { %493 = dma.done.wait [#allocation7], 2048  }
  0x26   :  { %494 = vsyncadd [#allocation7], 4294965248  ;;  %v501_v0 = vmov 0.0|0.0   ;;  %vm502_vm0 = vmmov 0   ;;  %v503_v1 = vmov 0.0   ;;  %v55_v2 = vld [vmem:[#allocation3] sm:$0xff]  ;;  %v148_v53 = vstv %s604_s0 }
  0x27   :  { %367 = vmatprep.subr.bf16.mxu0 %v501_v0  ;;  %329 = vmatprep.mubr.msk.f32.mxu0 %vm502_vm0, %v503_v1  ;;  %v56_v3 = vld [vmem:[#allocation3 + $0x8] sm:$0xff]  ;;  %v57_v4 = vld [vmem:[#allocation3 + $0x10] sm:$0xff]  ;;  %v58_v6 = vld [vmem:[#allocation3 + $0x18] sm:$0xff]  ;;  %s504_s28 = smov [#allocation8]  }
  0x28   :  { %391 = vmatprep.subr.bf16.mxu1 %v501_v0  ;;  %364 = vmatprep.mubr.msk.f32.mxu1 %vm502_vm0, %v503_v1  ;;  %v368_v5 = vpack.c.bf16 %v56_v3, %v55_v2  ;;  %v371_v7 = vpack.c.bf16 %v58_v6, %v57_v4  ;;  %v59_v8 = vld [vmem:[#allocation3 + $0x20] sm:$0xff]  ;;  %v60_v9 = vld [vmem:[#allocation3 + $0x28] sm:$0xff]  ;;  %v153_v12 = vld [vmem:[#allocation6 + $0x10] sm:$0xff]  ;;  %s251_s29 = sshll.u32 %s504_s28, 4  ;;  %s252_s29 = int_to_ptr.vmem [resolvable:$true] %s251_s29 }
  0x29   :  { %v151_v10 = vld [vmem:[#allocation6] sm:$0xff]  ;;  %v152_v11 = vld [vmem:[#allocation6 + $0x8] sm:$0xff]  ;;  %v154_v13 = vld [vmem:[#allocation6 + $0x18] sm:$0xff]  ;;  %v374_v14 = vpack.c.bf16 %v60_v9, %v59_v8  ;;  %p474_p3 = scmp.lt.s32.totalorder %s252_s29, %s252_s29 }
  0x2a   :  { %369 = vmatpush3.bf16.msra.mxu0 %v368_v5  ;;  %v392_v15 = vpack.c.bf16 %v152_v11, %v151_v10  ;;  %v61_v16 = vld [vmem:[#allocation3 + $0x30] sm:$0xff]  ;;  %v62_v17 = vld [vmem:[#allocation3 + $0x38] sm:$0xff]  ;;  %v395_v18 = vpack.c.bf16 %v154_v13, %v153_v12  ;;  %v155_v19 = vld [vmem:[#allocation6 + $0x20] sm:$0xff] }
  0x2b   :  { %370 = vmatprep.subr.bf16.mxu0 %v501_v0  ;;  %v156_v20 = vld [vmem:[#allocation6 + $0x28] sm:$0xff]  ;;  %v377_v21 = vpack.c.bf16 %v62_v17, %v61_v16  ;;  %v63_v22 = vld [vmem:[#allocation3 + $0x40] sm:$0xff]  ;;  %v157_v25 = vld [vmem:[#allocation6 + $0x30] sm:$0xff] }
  0x2c   :  { %393 = vmatpush3.bf16.msra.mxu1 %v392_v15  ;;  %v64_v23 = vld [vmem:[#allocation3 + $0x48] sm:$0xff]  ;;  %v398_v24 = vpack.c.bf16 %v156_v20, %v155_v19  ;;  %v158_v26 = vld [vmem:[#allocation6 + $0x38] sm:$0xff]  ;;  %v65_v28 = vld [vmem:[#allocation3 + $0x50] sm:$0xff] }
  0x2d   :  { %394 = vmatprep.subr.bf16.mxu1 %v501_v0  ;;  %v380_v27 = vpack.c.bf16 %v64_v23, %v63_v22  ;;  %v66_v29 = vld [vmem:[#allocation3 + $0x58] sm:$0xff]  ;;  %v401_v30 = vpack.c.bf16 %v158_v26, %v157_v25  ;;  %v67_v32 = vld [vmem:[#allocation3 + $0x60] sm:$0xff]  ;;  %v68_v33 = vld [vmem:[#allocation3 + $0x68] sm:$0xff] }
  0x2e   :  { %372 = vmatpush3.bf16.msra.mxu0 %v371_v7  ;;  %v383_v31 = vpack.c.bf16 %v66_v29, %v65_v28  ;;  %v386_v34 = vpack.c.bf16 %v68_v33, %v67_v32  ;;  %v69_v35 = vld [vmem:[#allocation3 + $0x70] sm:$0xff]  ;;  %v70_v36 = vld [vmem:[#allocation3 + $0x78] sm:$0xff]  ;;  %v54_v38 = vld [vmem:[%s605_s1] sm:$0xff] }
  0x2f   :  { %373 = vmatprep.subr.bf16.mxu0 %v501_v0  ;;  %v389_v37 = vpack.c.bf16 %v70_v36, %v69_v35  ;;  %v159_v39 = vld [vmem:[#allocation6 + $0x40] sm:$0xff]  ;;  %v160_v40 = vld [vmem:[#allocation6 + $0x48] sm:$0xff]  ;;  %v161_v42 = vld [vmem:[#allocation6 + $0x50] sm:$0xff] }
  0x30   :  { %396 = vmatpush3.bf16.msra.mxu1 %v395_v18  ;;  %v404_v41 = vpack.c.bf16 %v160_v40, %v159_v39  ;;  %v162_v43 = vld [vmem:[#allocation6 + $0x58] sm:$0xff]  ;;  %v163_v45 = vld [vmem:[#allocation6 + $0x60] sm:$0xff]  ;;  %v164_v46 = vld [vmem:[#allocation6 + $0x68] sm:$0xff] }
  0x31   :  { %397 = vmatprep.subr.bf16.mxu1 %v501_v0  ;;  %v407_v44 = vpack.c.bf16 %v162_v43, %v161_v42  ;;  %v410_v47 = vpack.c.bf16 %v164_v46, %v163_v45  ;;  %v165_v48 = vld [vmem:[#allocation6 + $0x70] sm:$0xff]  ;;  %v166_v49 = vld [vmem:[#allocation6 + $0x78] sm:$0xff]  ;;  %v261_v51 = vld [vmem:[%s607_s3] ss:$0 sm:$0xff]  ;;  %s469_s3 = scalar_lea.vmem %s252_s29, 128 }
  0x32   :  { %375 = vmatpush3.bf16.msra.mxu0 %v374_v14  ;;  %v413_v50 = vpack.c.bf16 %v166_v49, %v165_v48  ;;  %v262_v58 = vld [vmem:[%s609_s5] ss:$0 sm:$0xff]  ;;  %p470_p2 = scmp.ne.s32.totalorder %s252_s29, %s469_s3  ;;  %p475_p4 = scmp.lt.s32.totalorder %s469_s3, %s469_s3 }
  0x33   :  { %376 = vmatprep.subr.bf16.mxu0 %v501_v0 }
  0x34   :  { %399 = vmatpush3.bf16.msra.mxu1 %v398_v24  ;;  %p476_p5 = por %p475_p4, %p474_p3 }
  0x35   :  { %400 = vmatprep.subr.bf16.mxu1 %v501_v0 }
  0x36   :  { %378 = vmatpush3.bf16.msra.mxu0 %v377_v21  ;;  %p477_p6 = pnand %p476_p5, %p470_p2 }
  0x37   :  { %379 = vmatprep.subr.bf16.mxu0 %v501_v0 }
  0x38   :  { %402 = vmatpush3.bf16.msra.mxu1 %v401_v30 }
  0x39   :  { %403 = vmatprep.subr.bf16.mxu1 %v501_v0 }
  0x3a   :  { %381 = vmatpush3.bf16.msra.mxu0 %v380_v27 }
  0x3b   :  { %382 = vmatprep.subr.bf16.mxu0 %v501_v0 }
  0x3c   :  { %405 = vmatpush3.bf16.msra.mxu1 %v404_v41 }
  0x3d   :  { %406 = vmatprep.subr.bf16.mxu1 %v501_v0 }
  0x3e   :  { %384 = vmatpush3.bf16.msra.mxu0 %v383_v31 }
  0x3f   :  { %385 = vmatprep.subr.bf16.mxu0 %v501_v0 }
  0x40   :  { %408 = vmatpush3.bf16.msra.mxu1 %v407_v44 }
  0x41   :  { %409 = vmatprep.subr.bf16.mxu1 %v501_v0 }
  0x42   :  { %387 = vmatpush3.bf16.msra.mxu0 %v386_v34 }
  0x43   :  { %388 = vmatprep.subr.bf16.mxu0 %v501_v0 }
  0x44   :  { %411 = vmatpush3.bf16.msra.mxu1 %v410_v47 }
  0x45   :  { %412 = vmatprep.subr.bf16.mxu1 %v501_v0 }
  0x46   :  { %390 = vmatpush3.bf16.msra.mxu0 %v389_v37 }
  0x48   :  { %414 = vmatpush3.bf16.msra.mxu1 %v413_v50 }
  0x49   :  { %330 = vmatmul.mubr.f32.vlgmr.msra.gmra.mrb[0].mxu0 %v54_v38 }
 0x11c   :  { %v144_v52 = vpop.f32.mrb[0].mxu0 }
 0x11d   :  { %v145_v54 = vadd.f32 %v261_v51, %v144_v52  ;;  %v331_v55 = vpop.f32.mrb[1].mxu0 }
 0x11f   :  { %v149_v56 = vadd.f32 %v148_v53, %v145_v54 }
 0x121   :  { %423 = vtanh.f32 %v149_v56 }
 0x12b   :  { %v424_v57 = vpop.eup %423 }
 0x12c   :  { %365 = vmatmul.mubr.f32.vlgmr.msra.gmra.mrb[0].mxu1 %v424_v57 }
 0x1ff   :  { %v240_v59 = vpop.f32.mrb[0].mxu1 }
 0x200   :  { %v241_v60 = vadd.f32 %v262_v58, %v240_v59  ;;  %v366_v61 = vpop.f32.mrb[1].mxu1 }
 0x202   :  { %244 = vst [vmem:[#allocation8] sm:$0xff] %v241_v60 }
 0x203   :  { %480 = shalt.err (!%p477_p6)
}
 0x204   :  { %s481_s7 = scalar_lea.hbm %s610_s6, 128 }
 0x205   :  { %p482_p7 = scmp.ne.s32.totalorder %s610_s6, %s481_s7  ;;  %p485_p8 = scmp.lt.u32.totalorder %s481_s7, %s610_s6 }
 0x207   :  { %p487_p9 = pnand %p485_p8, %p482_p7 }
 0x209   :  { %490 = shalt.err (!%p487_p9)
}
 0x20a   :  { %254 = dma.vmem_to_hbm [thread:$0]  %s252_s29, 128, %s610_s6, [#allocation5]  }
 0x20b   :  { %495 = dma.done.wait [#allocation5], 128  }
 0x20c   :  { %496 = vsyncadd [#allocation5], 4294967168 }
 0x20d   :  { %258 = vsyncpa [#allocation4], 1 }
 0x20e   :  { %259 = vsyncpa [#allocation7], 1 }
 0x20f   :  { %260 = vsyncpa [#allocation5], 1 }

</bundles_post_ra>
